<compile_context>
chip_gen: v7x
topology: tpu7x:2x2x1
jax: 0.10.0
libtpu: 0.0.40
codegen_flags: <defaults>
</compile_context>

<pallas_src>
import jax
import jax.numpy as jnp
from jax.experimental import pallas as pl
from jax.experimental.pallas import tpu as pltpu


def _round_up(x: int, m: int) -> int:
    return ((x + m - 1) // m) * m


def _cdiv(a: int, b: int) -> int:
    return (a + b - 1) // b


def _physical_vmem_bytes() -> int:
    try:
        return int(pltpu.get_tpu_info().vmem_capacity_bytes)
    except Exception:
        return 64 << 20  # conservative fallback: v7x per-TC VMEM


def skip_mlp_kernel(x_ref, w1_ref, b1_ref, w2_ref, b2_ref, o_ref):
    # x_ref: (tm, F) f32    w1_ref: (F, H) bf16   b1_ref: (1, H) f32
    # w2_ref: (H, F) bf16   b2_ref: (1, F) f32    o_ref: (tm, F)
    x = x_ref[...]                                      # f32, reused for the skip add
    xb = x.astype(jnp.bfloat16)                         # bf16 operands -> full-rate MXU
    h = jnp.dot(xb, w1_ref[...], preferred_element_type=jnp.float32)
    h = jnp.maximum(h + b1_ref[...], 0.0)               # bias + ReLU in f32 on the VPU
    r = jnp.dot(h.astype(jnp.bfloat16), w2_ref[...],
                preferred_element_type=jnp.float32)
    r = r + b2_ref[...]
    o_ref[...] = (x + r).astype(o_ref.dtype)            # f32 skip connection


def prepare_residual_params(w1, b1, w2, b2):
    """One-time weight prep (bf16 cast + 2-D biases), hoisted out of the forward path."""
    feat_size, hidden = w1.shape
    return (w1.astype(jnp.bfloat16),
            b1.astype(jnp.float32).reshape(1, hidden),
            w2.astype(jnp.bfloat16),
            b2.astype(jnp.float32).reshape(1, feat_size))


def skip_connection(in_feats, params, *, tm=1024, vmem_limit_bytes=None):
    w1, b1, w2, b2 = params
    num_feats, feat_size = in_feats.shape
    hidden = w1.shape[1]

    # ---- Row-tile selection ------------------------------------------------
    if num_feats <= 8:
        tm_eff = num_feats                       # block dim == full array dim is legal
    else:
        # Multiple of 8 sublanes; at least 2 grid steps so the "parallel" row axis
        # shards across both TensorCores on v7x (no-op on single-core chips).
        tm_eff = min(_round_up(tm, 8), _round_up(_cdiv(num_feats, 2), 8))

    # ---- VMEM budget (single-buffered weights + double-buffered x/out tiles) ----
    def _vmem_bytes(rows: int) -> int:
        weights = (feat_size * hidden + hidden * feat_size) * 2      # bf16, 1 copy each
        biases = (hidden + feat_size) * 4
        io_tiles = 2 * 2 * rows * feat_size * 4                      # x + out, 2 buffers
        interm = rows * hidden * 4 + rows * feat_size * 4            # h (f32) + r
        return weights + biases + io_tiles + interm

    budget = int(_physical_vmem_bytes() * 0.75)   # ~48 MiB on v7x, ~96 MiB on v5e/v6e
    while tm_eff > 8 and _vmem_bytes(tm_eff) > budget:
        tm_eff = max(8, _round_up(tm_eff // 2, 8))
    # TODO(synk): if the resident weights alone exceed the budget, switch to
    # hidden-axis weight streaming instead of shrinking tm further.

    if vmem_limit_bytes is None:
        vmem_limit_bytes = min(max(int(_vmem_bytes(tm_eff) * 1.5), 32 << 20), budget)

    grid = (_cdiv(num_feats, tm_eff),)

    flops = 4 * num_feats * feat_size * hidden
    bytes_accessed = (num_feats * feat_size * 4 * 2                  # x in + out
                      + 2 * feat_size * hidden * 2                   # bf16 weights
                      + (hidden + feat_size) * 4)                    # biases

    resident = dict(pipeline_mode=pl.Buffered(1))   # single VMEM copy, no re-DMA

    out = pl.pallas_call(
        skip_mlp_kernel,
        out_shape=jax.ShapeDtypeStruct((num_feats, feat_size), in_feats.dtype),
        grid_spec=pltpu.PrefetchScalarGridSpec(
            num_scalar_prefetch=0,
            grid=grid,
            in_specs=[
                pl.BlockSpec((tm_eff, feat_size), lambda i: (i, 0)),             # x tile
                pl.BlockSpec((feat_size, hidden), lambda i: (0, 0), **resident),  # W1
                pl.BlockSpec((1, hidden), lambda i: (0, 0), **resident),          # b1
                pl.BlockSpec((hidden, feat_size), lambda i: (0, 0), **resident),  # W2
                pl.BlockSpec((1, feat_size), lambda i: (0, 0), **resident),       # b2
            ],
            out_specs=pl.BlockSpec((tm_eff, feat_size), lambda i: (i, 0)),
        ),
        compiler_params=pltpu.CompilerParams(
            dimension_semantics=("parallel",),
            vmem_limit_bytes=vmem_limit_bytes,
        ),
        cost_estimate=pl.CostEstimate(
            flops=flops, transcendentals=0, bytes_accessed=bytes_accessed),
    )(in_feats, w1, b1, w2, b2)

    return out


def skip_connection_ref_matched(in_feats, w1, b1, w2, b2):
    """Reference mirroring the kernel's bf16 MXU operands + f32 accumulation."""
    xb = in_feats.astype(jnp.bfloat16)
    h = jnp.dot(xb, w1.astype(jnp.bfloat16),
                preferred_element_type=jnp.float32) + b1.astype(jnp.float32)
    h = jnp.maximum(h, 0.0)
    r = jnp.dot(h.astype(jnp.bfloat16), w2.astype(jnp.bfloat16),
                preferred_element_type=jnp.float32) + b2.astype(jnp.float32)
    return in_feats + r


def skip_connection_ref_f32(in_feats, w1, b1, w2, b2):
    """Pure-f32 semantics of the original module (loose sanity check)."""
    h = jnp.maximum(in_feats @ w1 + b1, 0.0)
    return in_feats + (h @ w2 + b2)


if __name__ == "__main__":
    key = jax.random.PRNGKey(0)

    # (num_feats, feat_size, hidden):
    #   case 1: tiny, exercises >=2-grid-step clamp
    #   case 2: ragged rows + non-128 lane widths (edge-block clipping, no HBM pad)
    #   case 3: lane-aligned path (feat_size % 128 == 0)
    cases = [
        (16, 32, 64),
        (200, 48, 96),
        (512, 128, 256),
    ]

    for num_feats, feat_size, hidden in cases:
        key, kx, kw1, kb1, kw2, kb2 = jax.random.split(key, 6)

        in_feats = jax.random.normal(kx, (num_feats, feat_size), dtype=jnp.float32)
        # Deterministic parameter init (synthetic, not a checkpoint).
        w1 = jax.random.normal(kw1, (feat_size, hidden), dtype=jnp.float32) * 0.1
        b1 = jax.random.normal(kb1, (hidden,), dtype=jnp.float32) * 0.1
        w2 = jax.random.normal(kw2, (hidden, feat_size), dtype=jnp.float32) * 0.1
        b2 = jax.random.normal(kb2, (feat_size,), dtype=jnp.float32) * 0.1

        params = prepare_residual_params(w1, b1, w2, b2)   # one-time, outside forward

        out = skip_connection(in_feats, params)
        out = jax.block_until_ready(out)
        assert out.shape == (num_feats, feat_size)

        # Tight check against a precision-matched reference (same bf16 casts).
        ref_m = skip_connection_ref_matched(in_feats, w1, b1, w2, b2)
        assert jnp.allclose(out, ref_m, atol=1e-4, rtol=1e-4), "mismatch vs matched ref"

        # Loose check against the module's f32 semantics (bf16 matmul rounding only).
        ref_f = skip_connection_ref_f32(in_feats, w1, b1, w2, b2)
        assert jnp.allclose(out, ref_f, atol=0.15, rtol=0.15), "mismatch vs f32 ref"

    print("KERNEL_OK")
</pallas_src>

<mosaic_0001>
module attributes {stable_mosaic.version = 11 : i64} {
  func.func @skip_mlp_kernel(%arg0: i32, %arg1: memref<8x32xf32, #tpu.memory_space<vmem>>, %arg2: memref<32x64xbf16, #tpu.memory_space<vmem>>, %arg3: memref<1x64xf32, #tpu.memory_space<vmem>>, %arg4: memref<64x32xbf16, #tpu.memory_space<vmem>>, %arg5: memref<1x32xf32, #tpu.memory_space<vmem>>, %arg6: memref<8x32xf32, #tpu.memory_space<vmem>>) attributes {dimension_semantics = [#tpu.dimension_semantics<parallel>], iteration_bounds = array<i64: 2>, scalar_prefetch = 0 : i64, scratch_operands = 0 : i64, tpu.core_type = #tpu.core_type<tc>, window_params = [{transform_indices = @transform_0, window_bounds = array<i64: 8, 32>}, {pipeline_mode = #tpu.pipeline_mode<synchronous>, transform_indices = @transform_1, window_bounds = array<i64: 32, 64>}, {pipeline_mode = #tpu.pipeline_mode<synchronous>, transform_indices = @transform_2, window_bounds = array<i64: 1, 64>}, {pipeline_mode = #tpu.pipeline_mode<synchronous>, transform_indices = @transform_3, window_bounds = array<i64: 64, 32>}, {pipeline_mode = #tpu.pipeline_mode<synchronous>, transform_indices = @transform_4, window_bounds = array<i64: 1, 32>}, {transform_indices = @transform_5, window_bounds = array<i64: 8, 32>}]} {
    %c0 = arith.constant 0 : index
    %c0_0 = arith.constant 0 : index
    %0 = vector.load %arg1[%c0, %c0_0] : memref<8x32xf32, #tpu.memory_space<vmem>>, vector<8x32xf32>
    %1 = arith.truncf %0 : vector<8x32xf32> to vector<8x32xbf16>
    %c0_1 = arith.constant 0 : index
    %c0_2 = arith.constant 0 : index
    %2 = vector.load %arg2[%c0_1, %c0_2] : memref<32x64xbf16, #tpu.memory_space<vmem>>, vector<32x64xbf16>
    %cst = arith.constant dense<0.000000e+00> : vector<8x64xf32>
    %3 = tpu.matmul %1, %2, %cst {dimension_numbers = #tpu.dot_dimension_numbers<[1], [0], [0], [1], [0, 0, 1, 1], [], []>} : vector<8x32xbf16>, vector<32x64xbf16>, vector<8x64xf32> -> vector<8x64xf32>
    %c0_3 = arith.constant 0 : index
    %c0_4 = arith.constant 0 : index
    %4 = vector.load %arg3[%c0_3, %c0_4] : memref<1x64xf32, #tpu.memory_space<vmem>>, vector<1x64xf32>
    %5 = vector.broadcast %4 : vector<1x64xf32> to vector<8x64xf32>
    %6 = arith.addf %3, %5 : vector<8x64xf32>
    %cst_5 = arith.constant 0.000000e+00 : f32
    %7 = vector.broadcast %cst_5 : f32 to vector<8x64xf32>
    %8 = arith.maximumf %6, %7 : vector<8x64xf32>
    %9 = arith.truncf %8 : vector<8x64xf32> to vector<8x64xbf16>
    %c0_6 = arith.constant 0 : index
    %c0_7 = arith.constant 0 : index
    %10 = vector.load %arg4[%c0_6, %c0_7] : memref<64x32xbf16, #tpu.memory_space<vmem>>, vector<64x32xbf16>
    %cst_8 = arith.constant dense<0.000000e+00> : vector<8x32xf32>
    %11 = tpu.matmul %9, %10, %cst_8 {dimension_numbers = #tpu.dot_dimension_numbers<[1], [0], [0], [1], [0, 0, 1, 1], [], []>} : vector<8x64xbf16>, vector<64x32xbf16>, vector<8x32xf32> -> vector<8x32xf32>
    %c0_9 = arith.constant 0 : index
    %c0_10 = arith.constant 0 : index
    %12 = vector.load %arg5[%c0_9, %c0_10] : memref<1x32xf32, #tpu.memory_space<vmem>>, vector<1x32xf32>
    %13 = vector.broadcast %12 : vector<1x32xf32> to vector<8x32xf32>
    %14 = arith.addf %11, %13 : vector<8x32xf32>
    %15 = arith.addf %0, %14 : vector<8x32xf32>
    %c0_11 = arith.constant 0 : index
    %c0_12 = arith.constant 0 : index
    %16 = vector.load %arg6[%c0_11, %c0_12] : memref<8x32xf32, #tpu.memory_space<vmem>>, vector<8x32xf32>
    tpu.vector_store %arg6[%c0_11, %c0_12], %15 {strides = array<i32>} : memref<8x32xf32, #tpu.memory_space<vmem>>, vector<8x32xf32>,
    return
  }
  func.func @transform_0(%arg0: i32) -> (i32, i32) {
    %c0_i32 = arith.constant 0 : i32
    %c0_i32_0 = arith.constant 0 : i32
    return %arg0, %c0_i32 : i32, i32
  }
  func.func @transform_1(%arg0: i32) -> (i32, i32) {
    %c0_i32 = arith.constant 0 : i32
    %c0_i32_0 = arith.constant 0 : i32
    %c0_i32_1 = arith.constant 0 : i32
    return %c0_i32, %c0_i32_0 : i32, i32
  }
  func.func @transform_2(%arg0: i32) -> (i32, i32) {
    %c0_i32 = arith.constant 0 : i32
    %c0_i32_0 = arith.constant 0 : i32
    %c0_i32_1 = arith.constant 0 : i32
    return %c0_i32, %c0_i32_0 : i32, i32
  }
  func.func @transform_3(%arg0: i32) -> (i32, i32) {
    %c0_i32 = arith.constant 0 : i32
    %c0_i32_0 = arith.constant 0 : i32
    %c0_i32_1 = arith.constant 0 : i32
    return %c0_i32, %c0_i32_0 : i32, i32
  }
  func.func @transform_4(%arg0: i32) -> (i32, i32) {
    %c0_i32 = arith.constant 0 : i32
    %c0_i32_0 = arith.constant 0 : i32
    %c0_i32_1 = arith.constant 0 : i32
    return %c0_i32, %c0_i32_0 : i32, i32
  }
  func.func @transform_5(%arg0: i32) -> (i32, i32) {
    %c0_i32 = arith.constant 0 : i32
    %c0_i32_0 = arith.constant 0 : i32
    return %arg0, %c0_i32 : i32, i32
  }
}

</mosaic_0001>

<bundles_post_ra>
// kernel: tpu_custom_call.1
= control target key start
LH: loop header
LB: loop body
LE: loop exit
PB: predicated region body
PF: predicated region fallthrough
CT: control target
= control target key end

     0   :  { %10 = vsyncpa [#allocation3], 0  ;;  %s768_s0 = inlined_call_operand.vmem [shape: f32[16,32], index: 0, kind: input, shape index: {}]   ;;  %s769_s1 = inlined_call_operand.vmem [shape: bf16[32,64], index: 1, kind: input, shape index: {}]   ;;  %s770_s2 = inlined_call_operand.vmem [shape: f32[1,64], index: 2, kind: input, shape index: {}]   ;;  %s771_s3 = inlined_call_operand.vmem [shape: bf16[64,32], index: 3, kind: input, shape index: {}]   ;;  %s772_s4 = inlined_call_operand.vmem [shape: f32[1,32], index: 4, kind: input, shape index: {}]   ;;  %s773_s5 = inlined_call_operand.hbm [shape: f32[16,32], index: 5, kind: output, shape index: {}]  }
   0x1   :  { %12 = vsyncpa [#allocation3 + $0x1], 0  ;;  %s642_s18 = smov 0   ;;  %s644_s19 = smov 0  }
   0x2   :  { %s646_s20 = smov 0   ;;  %s648_s21 = smov 0  }
   0x3 LB: > { %s663_s22 = sadd.s32 4294967295, %s607_s21   ;;  %s450_s23 = sadd.s32 4294967294, %s607_s21   ;;  %s607_s21 = sphi %s648_s21, %s779_s21   ;;  %s603_s20 = sphi %s646_s20, %s778_s20   ;;  %s599_s19 = sphi %s644_s19, %s777_s19   ;;  %s595_s18 = sphi %s642_s18, %s776_s18  }
   0x4   : > { %s667_s24 = sadd.s32 1, %s607_s21   ;;  %s135_s25 = sadd.s32 1, %s603_s20 }
   0x5   : > { %s132_s26 = ssub.s32 %s607_s21, %s667_s24  ;;  %p145_p0 = scmp.ne.s32.totalorder %s603_s20, %s599_s19 }
   0x6   : > { %p133_p1 = scmp.eq.s32.totalorder %s132_s26, 0  ;;  %p146_p2 = scmp.eq.s32.totalorder %s663_s22, 1 }
   0x7   : > { %p151_p3 = scmp.ne.s32.totalorder %s599_s19, %s595_s18  ;;  %p152_p4 = scmp.eq.s32.totalorder %s450_s23, 1 }
   0x8   : > { %s678_s27 = scalar_select %p133_p1, %s603_s20, %s135_s25  }
   0x9   : > { %p680_p5 = por %p146_p2, %p145_p0  ;;  %p684_p6 = por %p152_p4, %p151_p3 }
   0xa   : > { %p453_p7 = scmp.ge.s32.totalorder %s607_s21, 1  ;;  %p189_p8 = scmp.lt.s32.totalorder %s607_s21, 3 }
   0xc   : > { %p190_p9 = pnand %p453_p7, %p189_p8 }
   0xd   : > { %v539_v0 = vld [vmem:[%s769_s1] sm:$0xff] (!%p190_p9)   ;;  %v609_v1 = vmov (!%p190_p9), 0.0   ;;  %v540_v2 = vld [vmem:[%s769_s1 + $0x8] sm:$0xff] (!%p190_p9)   ;;  %vm610_vm0 = vmmov (!%p190_p9), 0   ;;  %p216_p10 = scmp.lt.s32.totalorder (!%p190_p9), %s663_s22, 1  ;;  %vm246_vm1 = vcmask (!%p190_p9), 261120  }
   0xe   : > { %193 = sbr.rel (%p190_p9) target bundleno = 476 (0x1dc), region = 40  ;;  %478 = vmatprep.subr.bf16.mxu0 (!%p190_p9), %v609_v1  ;;  %486 = vmatprep.subr.bf16.mxu1 (!%p190_p9), %v609_v1  ;;  %v541_v3 = vld [vmem:[%s771_s3] sm:$0xff] (!%p190_p9)   ;;  %v542_v4 = vld [vmem:[%s771_s3 + $0x8] sm:$0xff] (!%p190_p9)   ;;  %v543_v7 = vld [vmem:[%s771_s3 + $0x10] sm:$0xff] (!%p190_p9)   ;;  %vm331_vm2 = vcmask (!%p190_p9), 523264   ;;  %s213_s8 = sand.u32 (!%p190_p9), 1, %s599_s19  }
   0xf   : > { %479 = vmatpush3.bf16.msra.mxu0 (!%p190_p9), %v539_v0  ;;  %482 = vmatprep.mubr.msk.bf16.mxu0 (!%p190_p9), %vm610_vm0, %v609_v1  ;;  %v544_v8 = vld [vmem:[%s771_s3 + $0x18] sm:$0xff] (!%p190_p9)   ;;  %v456_v9 = vld [vmem:[%s770_s2] ss:$0 sm:$0xff] (!%p190_p9)  ;;  %s454_s9 = sshll.u32 (!%p190_p9), %s213_s8, 3  ;;  %s467_s12 = sshll.u32 (!%p190_p9), %s663_s22, 7 }
  0x10   : > { %480 = vmatprep.subr.bf16.mxu0 (!%p190_p9), %v609_v1  ;;  %494 = vmatprep.mubr.msk.bf16.mxu1 (!%p190_p9), %vm610_vm0, %v609_v1  ;;  %v460_v17 = vld [vmem:[%s772_s4] ss:$0 sm:$0xff] (!%p190_p9)  ;;  %s215_s13 = scalar_lea.vmem (!%p190_p9), [#allocation2], %s454_s9  ;;  %s611_s25 = smov (!%p190_p9), [#allocation2]  }
  0x11   : > { %487 = vmatpush3.bf16.msra.mxu1 (!%p190_p9), %v541_v3  ;;  %s549_s26 = sshll.u32 (!%p190_p9), %s611_s25, 4  ;;  %s550_s26 = int_to_ptr.vmem [resolvable:$false] %s549_s26 }
  0x12   : > { %488 = vmatprep.subr.bf16.mxu1 (!%p190_p9), %v609_v1  ;;  %s551_s30 = scalar_lea.vmem (!%p190_p9), %s550_s26, 256 }
  0x13   : > { %481 = vmatpush3.bf16.msra.mxu0 (!%p190_p9), %v540_v2 }
  0x15   : > { %s217_s11 = scalar_select %p216_p10, %s663_s22, 1  ;;  %489 = vmatpush3.bf16.msra.mxu1 %v542_v4 }
  0x16   : > { %490 = vmatprep.subr.bf16.mxu1 %v609_v1  ;;  %s378_s22 = scalar_lea.sflag [#allocation3], %s213_s8 }
  0x17   : > { %s455_s14 = sshll.u32 %s217_s11, 3 }
  0x18   : > { %s219_s17 = scalar_lea.vmem %s768_s0, %s455_s14  ;;  %s391_s14 = sshll.u32 %s215_s13, 4  ;;  %s727_s14 = int_to_ptr.vmem [resolvable:$true] %s391_s14 }
  0x19   : > { %v221_v5 = vld [vmem:[%s219_s17] sm:$0xff]  ;;  %491 = vmatpush3.bf16.msra.mxu1 %v543_v7  ;;  %s725_s17 = scalar_lea.hbm %s773_s5, %s467_s12  ;;  %s545_s23 = scalar_lea.vmem %s727_s14, 128 }
  0x1a   : > { %v222_v6 = vpack.c.bf16 %v221_v5, %v221_v5  ;;  %492 = vmatprep.subr.bf16.mxu1 %v609_v1  ;;  %p546_p11 = scmp.ne.s32.totalorder %s727_s14, %s545_s23  ;;  %p552_p0 = scmp.lt.s32.totalorder %s727_s14, %s550_s26 }
  0x1b   : > { %p553_p1 = scmp.lt.s32.totalorder %s551_s30, %s545_s23 }
  0x1c   : > { %483 = vmatmul.mubr.msk.bf16.vlgmr.msra.gmra.mrb[0].mxu0 %vm246_vm1, %v222_v6  ;;  %p547_p12 = pnand %p546_p11, %p680_p5 }
  0x1d   : > { %493 = vmatpush3.bf16.msra.mxu1 %v544_v8  ;;  %p554_p2 = por %p553_p1, %p552_p0 }
  0x1e   : > { %p548_p13 = pneg %p547_p12 }
  0x20   : > { %p555_p3 = pnand %p554_p2, %p548_p13 }
  0xef   : > { %v284_v10 = vpop.f32.mrb[0].mxu0 }
  0xf0   : > { %v285_v11 = vadd.f32 %v456_v9, %v284_v10  ;;  %v484_v12 = vpop.f32.mrb[1].mxu0 }
  0xf1   : > { %v287_v13 = vpop.f32.mrb[2].mxu0 }
  0xf2   : > { %v290_v14 = vmax.f32 %v285_v11, 0.0  ;;  %v485_v15 = vpop.f32.mrb[3].mxu0 }
  0xf4   : > { %v291_v16 = vpack.c.bf16 %v290_v14, %v290_v14 }
  0xf6   : > { %495 = vmatmul.mubr.msk.bf16.vlgmr.msra.gmra.mrb[0].mxu1 %vm331_vm2, %v291_v16 }
 0x1c9   : > { %v369_v18 = vpop.f32.mrb[0].mxu1 }
 0x1ca   : > { %v370_v19 = vadd.f32 %v460_v17, %v369_v18  ;;  %v496_v20 = vpop.f32.mrb[1].mxu1 }
 0x1cb   : > { %v372_v21 = vpop.f32.mrb[2].mxu1 }
 0x1cc   : > { %v375_v22 = vadd.f32 %v370_v19, %v221_v5  ;;  %v497_v23 = vpop.f32.mrb[3].mxu1 }
 0x1ce   : > { %376 = vst.msk [vmem:[%s215_s13] sm:$0xff] %vm246_vm1, %v375_v22 }
 0x1cf   : > { %558 = shalt.err (!%p555_p3)
}
 0x1d0   : > { %s559_s6 = scalar_lea.hbm %s725_s17, 128  ;;  %s563_s9 = scalar_lea.hbm %s773_s5, 256 }
 0x1d1   : > { %p560_p4 = scmp.ne.s32.totalorder %s725_s17, %s559_s6  ;;  %p564_p9 = scmp.lt.u32.totalorder %s725_s17, %s773_s5 }
 0x1d2   : > { %p565_p10 = scmp.lt.u32.totalorder %s563_s9, %s559_s6  ;;  %p567_p12 = scmp.lt.u32.totalorder %s559_s6, %s725_s17 }
 0x1d3   : > { %p561_p7 = pnand %p560_p4, %p680_p5 }
 0x1d4   : > { %p566_p11 = por %p565_p10, %p564_p9 }
 0x1d5   : > { %p562_p8 = pneg %p561_p7 }
 0x1d6   : > { %p568_p13 = por %p567_p12, %p566_p11 }
 0x1d8   : > { %p569_p0 = pnand %p568_p13, %p562_p8 }
 0x1da   : > { %572 = shalt.err (!%p569_p0)
}
 0x1db   : > { %498 = dma.vmem_to_hbm [thread:$0]  (%p680_p5), %s727_s14, 128, %s725_s17, %s378_s22  }
 0x1dc PF: > { %p504_p1 = scmp.ge.s32.totalorder %s607_s21, 2  ;;  %s403_s12 = sand.u32 1, %s595_s18  }
 0x1dd   : > { %s404_s13 = scalar_lea.sflag [#allocation3], %s403_s12 }
 0x1de   : > { %p501_p2 = pnand %p504_p1, %p684_p6 }
 0x1e0   : > { %590 = dma.done.wait (!%p501_p2), %s404_s13, 128  }
 0x1e1   : > { %592 = vsyncadd (!%p501_p2), %s404_s13, 4294967168  ;;  %p15_p3 = scmp.ge.s32.totalorder %s667_s24, 4   ;;  %s776_s18 = smov %s599_s19 }
 0x1e2   : > { %s777_s19 = smov %s603_s20  ;;  %s778_s20 = smov %s678_s27 }
 0x1e3   : > { %s779_s21 = smov %s667_s24  ;;  %17 = sbr.rel (!%p15_p3) target bundleno = 3 (0x3), region = 75 }
 0x1ea   :  { %409 = vsyncpa [#allocation3], 1 }
 0x1eb   :  { %411 = vsyncpa [#allocation3 + $0x1], 1 }

</bundles_post_ra>
